<compile_context>
chip_gen: v7x
topology: tpu7x:2x2x1
jax: 0.10.0
libtpu: 0.0.40
codegen_flags: <defaults>
</compile_context>

<pallas_src>
import functools

import jax
import jax.numpy as jnp
from jax import lax
from jax.experimental import pallas as pl
from jax.experimental.pallas import tpu as pltpu


def _res_mobile_block_kernel(x_ref, wdw_ref, b1_ref, wpw_ref, b2_ref, out_ref,
                             *, L, K, dilation, pad):
    """One grid step: a lane-dense (C, W) slab holding W/L whole sequences."""
    C, W = x_ref.shape

    x = x_ref[...]                                            # (C, W) f32, lane-dense
    # Position of each lane within its own length-L sequence (sequences packed along lanes).
    pos = lax.broadcasted_iota(jnp.int32, (C, W), 1) % L

    # ---- depthwise conv1d (groups=C): K-tap FIR via XLU rolls + boundary masks -------------
    acc = jnp.zeros((C, W), jnp.float32)
    for t in range(K):
        off = t * dilation - pad
        if off == 0:
            tap = x
        else:
            tap = pltpu.roll(x, shift=(-off) % W, axis=1)     # tap[:, j] = x[:, (j+off) % W]
            src = pos + off
            tap = jnp.where((src >= 0) & (src < L), tap, 0.0)  # zero outside own sequence
        acc = acc + tap * wdw_ref[:, t:t + 1]                  # BN1 scale pre-folded into taps

    # ---- BN1 bias (folded) + ReLU -----------------------------------------------------------
    h = jnp.maximum(acc + b1_ref[...], 0.0)

    # ---- pointwise 1x1 conv on the MXU: (Cout, C) @ (C, W), bf16 in / f32 acc ---------------
    y = jnp.dot(wpw_ref[...], h.astype(jnp.bfloat16),
                preferred_element_type=jnp.float32)

    # ---- BN2 bias (folded) + ReLU + residual add (residual = resident x block) --------------
    y = jnp.maximum(y + b2_ref[...], 0.0)
    out_ref[...] = x + y


def _pick_batch_tile(N, L, C, Cout, block_budget_bytes=24 * 1024 * 1024):
    """Pick how many sequences to pack per grid step (B_tile | N)."""
    # Rough per-lane-column VMEM bytes: double-buffered in/out blocks + ~10 f32 temporaries.
    per_col = 4 * (2 * 2 * (C + Cout) + 10 * C)
    max_w = max(L, block_budget_bytes // per_col)
    divisors = [b for b in range(1, N + 1) if N % b == 0]
    aligned = [b for b in divisors if (b * L) % 128 == 0 and b * L <= max_w]
    if aligned:
        # Prefer >=2 grid steps (both v7x TensorCores) when blocks stay wide enough
        # (>=512 lanes amortizes the ~0.35 us per-step pipeline overhead).
        split = [b for b in aligned if b < N and b * L >= 512]
        return max(split) if split else max(aligned)
    # Fallback: one block covering the whole array (always a legal BlockSpec).
    return N


def res_mobile_block1d(x_ncl, params, *, kernel_size, dilation=1):
    """x_ncl: (N, C, L) float32 (PyTorch NCW layout). Returns (N, C, L) float32."""
    N, C, L = x_ncl.shape
    K = kernel_size
    eff = (K - 1) * dilation
    # PyTorch (stride=1) pads with (K-1)*dilation // 2; an odd effective receptive field would
    # change the output length and break the residual add in PyTorch too.
    assert eff % 2 == 0, "residual block requires even (kernel_size-1)*dilation"
    pad = eff // 2

    # ---- fold BatchNorm (eval mode): scales into the weights, biases kept as adds ----------
    eps = 1e-5
    s1 = params["g1"] / jnp.sqrt(params["v1"] + eps)
    b1 = params["be1"] + (params["b_dw"] - params["m1"]) * s1
    s2 = params["g2"] / jnp.sqrt(params["v2"] + eps)
    b2 = params["be2"] + (params["b_pw"] - params["m2"]) * s2

    # depthwise weight: PyTorch (C, 1, K) -> (C, K), BN1 scale folded in (f32)
    w_dw = (params["w_dw"][:, 0, :] * s1[:, None]).astype(jnp.float32)
    # pointwise weight: PyTorch (Cout, C, 1) -> (Cout, C); fold BN2 scale in f32, then bf16
    w_pw = (params["w_pw"][:, :, 0] * s2[:, None]).astype(jnp.bfloat16)
    Cout = w_pw.shape[0]
    assert Cout == C, "residual add requires out_channel == in_channel"

    B_tile = _pick_batch_tile(N, L, C, Cout)
    W = B_tile * L
    grid = (N // B_tile,)

    # Lane-dense layout plumbing (outside the kernel): (N, C, L) -> (C, N*L).
    x2 = jnp.transpose(x_ncl.astype(jnp.float32), (1, 0, 2)).reshape(C, N * L)

    kernel = functools.partial(_res_mobile_block_kernel,
                               L=L, K=K, dilation=dilation, pad=pad)

    out2 = pl.pallas_call(
        kernel,
        out_shape=jax.ShapeDtypeStruct((Cout, N * L), jnp.float32),
        grid_spec=pltpu.PrefetchScalarGridSpec(
            num_scalar_prefetch=0,
            grid=grid,
            in_specs=[
                pl.BlockSpec((C, W), lambda i: (0, i)),       # x (also the residual)
                pl.BlockSpec((C, K), lambda i: (0, 0)),       # depthwise taps (BN1-scaled)
                pl.BlockSpec((C, 1), lambda i: (0, 0)),       # bn1 bias (folded)
                pl.BlockSpec((Cout, C), lambda i: (0, 0)),    # pointwise weight (BN2-scaled, bf16)
                pl.BlockSpec((Cout, 1), lambda i: (0, 0)),    # bn2 bias (folded)
            ],
            out_specs=pl.BlockSpec((Cout, W), lambda i: (0, i)),
        ),
        compiler_params=pltpu.CompilerParams(
            dimension_semantics=("parallel",),
            vmem_limit_bytes=48 * 1024 * 1024,
        ),
    )(
        x2,
        w_dw,
        b1.reshape(C, 1).astype(jnp.float32),
        w_pw,
        b2.reshape(Cout, 1).astype(jnp.float32),
    )

    return jnp.transpose(out2.reshape(Cout, N, L), (1, 0, 2))


def _reference(x, params, *, kernel_size, dilation=1, eps=1e-5):
    """Pure-JAX eval-mode reference matching PyTorch ResMobileBlock1d semantics."""
    N, C, L = x.shape
    K = kernel_size
    pad = ((K - 1) * dilation) // 2
    w_dw = params["w_dw"][:, 0, :]                                  # (C, K)
    xp = jnp.pad(x, ((0, 0), (0, 0), (pad, pad)))
    acc = jnp.zeros((N, C, L), jnp.float32)
    for t in range(K):
        s = t * dilation
        acc = acc + xp[:, :, s:s + L] * w_dw[:, t][None, :, None]
    acc = acc + params["b_dw"][None, :, None]
    h = (acc - params["m1"][None, :, None]) / jnp.sqrt(params["v1"][None, :, None] + eps)
    h = jnp.maximum(h * params["g1"][None, :, None] + params["be1"][None, :, None], 0.0)
    y = jnp.einsum("oc,ncl->nol", params["w_pw"][:, :, 0], h) + params["b_pw"][None, :, None]
    y = (y - params["m2"][None, :, None]) / jnp.sqrt(params["v2"][None, :, None] + eps)
    y = jnp.maximum(y * params["g2"][None, :, None] + params["be2"][None, :, None], 0.0)
    return x + y


def make_params(key, C, K):
    ks = jax.random.split(key, 6)
    return {
        # MobileBlock1d.conv_w : depthwise Conv1d(C, C, K, groups=C) + BN
        "w_dw": 0.1 * jax.random.normal(ks[0], (C, 1, K), jnp.float32),
        "b_dw": 0.05 * jax.random.normal(ks[1], (C,), jnp.float32),
        "g1": jnp.ones((C,), jnp.float32),
        "be1": jnp.zeros((C,), jnp.float32),
        "m1": 0.01 * jax.random.normal(ks[2], (C,), jnp.float32),
        "v1": jnp.ones((C,), jnp.float32) * 0.9,
        # MobileBlock1d.conv_d : pointwise Conv1d(C, C, 1) + BN
        "w_pw": 0.1 * jax.random.normal(ks[3], (C, C, 1), jnp.float32),
        "b_pw": 0.05 * jax.random.normal(ks[4], (C,), jnp.float32),
        "g2": jnp.ones((C,), jnp.float32),
        "be2": jnp.zeros((C,), jnp.float32),
        "m2": 0.01 * jax.random.normal(ks[5], (C,), jnp.float32),
        "v2": jnp.ones((C,), jnp.float32) * 1.1,
    }


if __name__ == "__main__":
    key = jax.random.PRNGKey(0)
    kx, kp = jax.random.split(key)

    N, C, L = 16, 8, 16         # (batch, channels, sequence length) — NCW, like PyTorch
    K, DIL = 3, 1               # kernel_size, dilation (stride = 1)

    x = jax.random.normal(kx, (N, C, L), jnp.float32)
    params = make_params(kp, C, K)

    out = res_mobile_block1d(x, params, kernel_size=K, dilation=DIL)
    out = jax.block_until_ready(out)
    assert out.shape == (N, C, L)

    ref = _reference(x, params, kernel_size=K, dilation=DIL)
    err = float(jnp.max(jnp.abs(out - ref)))
    assert err < 2e-2, f"max abs error vs reference: {err}"

    print("KERNEL_OK")
</pallas_src>

<mosaic_0001>
module attributes {stable_mosaic.version = 11 : i64} {
  func.func @_res_mobile_block_kernel(%arg0: i32, %arg1: memref<8x256xf32, #tpu.memory_space<vmem>>, %arg2: memref<8x3xf32, #tpu.memory_space<vmem>>, %arg3: memref<8x1xf32, #tpu.memory_space<vmem>>, %arg4: memref<8x8xbf16, #tpu.memory_space<vmem>>, %arg5: memref<8x1xf32, #tpu.memory_space<vmem>>, %arg6: memref<8x256xf32, #tpu.memory_space<vmem>>) attributes {dimension_semantics = [#tpu.dimension_semantics<parallel>], iteration_bounds = array<i64: 1>, scalar_prefetch = 0 : i64, scratch_operands = 0 : i64, tpu.core_type = #tpu.core_type<tc>, window_params = [{transform_indices = @transform_0, window_bounds = array<i64: 8, 256>}, {pipeline_mode = #tpu.pipeline_mode<synchronous>, transform_indices = @transform_1, window_bounds = array<i64: 8, 3>}, {pipeline_mode = #tpu.pipeline_mode<synchronous>, transform_indices = @transform_2, window_bounds = array<i64: 8, 1>}, {pipeline_mode = #tpu.pipeline_mode<synchronous>, transform_indices = @transform_3, window_bounds = array<i64: 8, 8>}, {pipeline_mode = #tpu.pipeline_mode<synchronous>, transform_indices = @transform_4, window_bounds = array<i64: 8, 1>}, {transform_indices = @transform_5, window_bounds = array<i64: 8, 256>}]} {
    %c0 = arith.constant 0 : index
    %c0_0 = arith.constant 0 : index
    %0 = vector.load %arg1[%c0, %c0_0] : memref<8x256xf32, #tpu.memory_space<vmem>>, vector<8x256xf32>
    %1 = tpu.iota {dimensions = array<i32: 1>} : vector<8x256xi32>
    %c16_i32 = arith.constant 16 : i32
    %c0_i32 = arith.constant 0 : i32
    %2 = arith.cmpi eq, %c16_i32, %c0_i32 : i32
    %c1_i32 = arith.constant 1 : i32
    %3 = arith.select %2, %c1_i32, %c16_i32 : i32
    %4 = vector.broadcast %3 : i32 to vector<8x256xi32>
    %5 = arith.remsi %1, %4 : vector<8x256xi32>
    %c0_i32_1 = arith.constant 0 : i32
    %6 = vector.broadcast %c0_i32_1 : i32 to vector<8x256xi32>
    %7 = arith.cmpi ne, %5, %6 : vector<8x256xi32>
    %c0_i32_2 = arith.constant 0 : i32
    %8 = vector.broadcast %c0_i32_2 : i32 to vector<8x256xi32>
    %9 = arith.cmpi slt, %5, %8 : vector<8x256xi32>
    %c0_i32_3 = arith.constant 0 : i32
    %10 = arith.cmpi slt, %3, %c0_i32_3 : i32
    %11 = vector.broadcast %10 : i1 to vector<8x256xi1>
    %12 = vector.broadcast %11 : vector<8x256xi1> to vector<8x256xi1>
    %13 = arith.xori %9, %12 : vector<8x256xi1>
    %14 = arith.andi %13, %7 : vector<8x256xi1>
    %15 = vector.broadcast %3 : i32 to vector<8x256xi32>
    %16 = arith.addi %5, %15 : vector<8x256xi32>
    %17 = arith.select %14, %16, %5 : vector<8x256xi1>, vector<8x256xi32>
    %cst = arith.constant 0.000000e+00 : f32
    %18 = vector.broadcast %cst : f32 to vector<8x256xf32>
    %c1_i32_4 = arith.constant 1 : i32
    %19 = tpu.dynamic_rotate %0 by %c1_i32_4 dim 1 : vector<8x256xf32>, i32 -> vector<8x256xf32>
    %c-1_i32 = arith.constant -1 : i32
    %20 = vector.broadcast %c-1_i32 : i32 to vector<8x256xi32>
    %21 = arith.addi %17, %20 : vector<8x256xi32>
    %c0_i32_5 = arith.constant 0 : i32
    %22 = vector.broadcast %c0_i32_5 : i32 to vector<8x256xi32>
    %23 = arith.cmpi sge, %21, %22 : vector<8x256xi32>
    %c16_i32_6 = arith.constant 16 : i32
    %24 = vector.broadcast %c16_i32_6 : i32 to vector<8x256xi32>
    %25 = arith.cmpi slt, %21, %24 : vector<8x256xi32>
    %26 = arith.andi %23, %25 : vector<8x256xi1>
    %cst_7 = arith.constant 0.000000e+00 : f32
    %27 = vector.broadcast %cst_7 : f32 to vector<8x256xf32>
    %28 = arith.select %26, %19, %27 : vector<8x256xi1>, vector<8x256xf32>
    %c0_8 = arith.constant 0 : index
    %c0_9 = arith.constant 0 : index
    %29 = vector.load %arg2[%c0_8, %c0_9] : memref<8x3xf32, #tpu.memory_space<vmem>>, vector<8x1xf32>
    %30 = vector.broadcast %29 : vector<8x1xf32> to vector<8x256xf32>
    %31 = arith.mulf %28, %30 : vector<8x256xf32>
    %32 = arith.addf %18, %31 : vector<8x256xf32>
    %c0_10 = arith.constant 0 : index
    %c1 = arith.constant 1 : index
    %33 = vector.load %arg2[%c0_10, %c1] : memref<8x3xf32, #tpu.memory_space<vmem>>, vector<8x1xf32>
    %34 = vector.broadcast %33 : vector<8x1xf32> to vector<8x256xf32>
    %35 = arith.mulf %0, %34 : vector<8x256xf32>
    %36 = arith.addf %32, %35 : vector<8x256xf32>
    %c255_i32 = arith.constant 255 : i32
    %37 = tpu.dynamic_rotate %0 by %c255_i32 dim 1 : vector<8x256xf32>, i32 -> vector<8x256xf32>
    %c1_i32_11 = arith.constant 1 : i32
    %38 = vector.broadcast %c1_i32_11 : i32 to vector<8x256xi32>
    %39 = arith.addi %17, %38 : vector<8x256xi32>
    %c0_i32_12 = arith.constant 0 : i32
    %40 = vector.broadcast %c0_i32_12 : i32 to vector<8x256xi32>
    %41 = arith.cmpi sge, %39, %40 : vector<8x256xi32>
    %c16_i32_13 = arith.constant 16 : i32
    %42 = vector.broadcast %c16_i32_13 : i32 to vector<8x256xi32>
    %43 = arith.cmpi slt, %39, %42 : vector<8x256xi32>
    %44 = arith.andi %41, %43 : vector<8x256xi1>
    %cst_14 = arith.constant 0.000000e+00 : f32
    %45 = vector.broadcast %cst_14 : f32 to vector<8x256xf32>
    %46 = arith.select %44, %37, %45 : vector<8x256xi1>, vector<8x256xf32>
    %c0_15 = arith.constant 0 : index
    %c2 = arith.constant 2 : index
    %47 = vector.load %arg2[%c0_15, %c2] : memref<8x3xf32, #tpu.memory_space<vmem>>, vector<8x1xf32>
    %48 = vector.broadcast %47 : vector<8x1xf32> to vector<8x256xf32>
    %49 = arith.mulf %46, %48 : vector<8x256xf32>
    %50 = arith.addf %36, %49 : vector<8x256xf32>
    %c0_16 = arith.constant 0 : index
    %c0_17 = arith.constant 0 : index
    %51 = vector.load %arg3[%c0_16, %c0_17] : memref<8x1xf32, #tpu.memory_space<vmem>>, vector<8x1xf32>
    %52 = vector.broadcast %51 : vector<8x1xf32> to vector<8x256xf32>
    %53 = arith.addf %50, %52 : vector<8x256xf32>
    %cst_18 = arith.constant 0.000000e+00 : f32
    %54 = vector.broadcast %cst_18 : f32 to vector<8x256xf32>
    %55 = arith.maximumf %53, %54 : vector<8x256xf32>
    %c0_19 = arith.constant 0 : index
    %c0_20 = arith.constant 0 : index
    %56 = vector.load %arg4[%c0_19, %c0_20] : memref<8x8xbf16, #tpu.memory_space<vmem>>, vector<8x8xbf16>
    %57 = arith.truncf %55 : vector<8x256xf32> to vector<8x256xbf16>
    %cst_21 = arith.constant dense<0.000000e+00> : vector<8x256xf32>
    %58 = tpu.matmul %56, %57, %cst_21 {dimension_numbers = #tpu.dot_dimension_numbers<[1], [0], [0], [1], [0, 0, 1, 1], [], []>} : vector<8x8xbf16>, vector<8x256xbf16>, vector<8x256xf32> -> vector<8x256xf32>
    %c0_22 = arith.constant 0 : index
    %c0_23 = arith.constant 0 : index
    %59 = vector.load %arg5[%c0_22, %c0_23] : memref<8x1xf32, #tpu.memory_space<vmem>>, vector<8x1xf32>
    %60 = vector.broadcast %59 : vector<8x1xf32> to vector<8x256xf32>
    %61 = arith.addf %58, %60 : vector<8x256xf32>
    %cst_24 = arith.constant 0.000000e+00 : f32
    %62 = vector.broadcast %cst_24 : f32 to vector<8x256xf32>
    %63 = arith.maximumf %61, %62 : vector<8x256xf32>
    %64 = arith.addf %0, %63 : vector<8x256xf32>
    %c0_25 = arith.constant 0 : index
    %c0_26 = arith.constant 0 : index
    %65 = vector.load %arg6[%c0_25, %c0_26] : memref<8x256xf32, #tpu.memory_space<vmem>>, vector<8x256xf32>
    tpu.vector_store %arg6[%c0_25, %c0_26], %64 {strides = array<i32>} : memref<8x256xf32, #tpu.memory_space<vmem>>, vector<8x256xf32>,
    return
  }
  func.func @transform_0(%arg0: i32) -> (i32, i32) {
    %c0_i32 = arith.constant 0 : i32
    %c0_i32_0 = arith.constant 0 : i32
    return %c0_i32, %arg0 : i32, i32
  }
  func.func @transform_1(%arg0: i32) -> (i32, i32) {
    %c0_i32 = arith.constant 0 : i32
    %c0_i32_0 = arith.constant 0 : i32
    %c0_i32_1 = arith.constant 0 : i32
    return %c0_i32, %c0_i32_0 : i32, i32
  }
  func.func @transform_2(%arg0: i32) -> (i32, i32) {
    %c0_i32 = arith.constant 0 : i32
    %c0_i32_0 = arith.constant 0 : i32
    %c0_i32_1 = arith.constant 0 : i32
    return %c0_i32, %c0_i32_0 : i32, i32
  }
  func.func @transform_3(%arg0: i32) -> (i32, i32) {
    %c0_i32 = arith.constant 0 : i32
    %c0_i32_0 = arith.constant 0 : i32
    %c0_i32_1 = arith.constant 0 : i32
    return %c0_i32, %c0_i32_0 : i32, i32
  }
  func.func @transform_4(%arg0: i32) -> (i32, i32) {
    %c0_i32 = arith.constant 0 : i32
    %c0_i32_0 = arith.constant 0 : i32
    %c0_i32_1 = arith.constant 0 : i32
    return %c0_i32, %c0_i32_0 : i32, i32
  }
  func.func @transform_5(%arg0: i32) -> (i32, i32) {
    %c0_i32 = arith.constant 0 : i32
    %c0_i32_0 = arith.constant 0 : i32
    return %c0_i32, %arg0 : i32, i32
  }
}

</mosaic_0001>

<bundles_post_ra>
// kernel: tpu_custom_call.1
= control target key start
LH: loop header
LB: loop body
LE: loop exit
PB: predicated region body
PF: predicated region fallthrough
CT: control target
= control target key end

     0   :  { %v238_v1 = vmov 2   ;;  %v239_v2 = vmov 0   ;;  %s316_s0 = inlined_call_operand.vmem [shape: f32[8,256], index: 0, kind: input, shape index: {}]   ;;  %s317_s1 = inlined_call_operand.vmem [shape: f32[8,3], index: 1, kind: input, shape index: {}]   ;;  %s318_s2 = inlined_call_operand.vmem [shape: f32[8,1], index: 2, kind: input, shape index: {}]   ;;  %s319_s3 = inlined_call_operand.vmem [shape: bf16[8,8], index: 3, kind: input, shape index: {}]   ;;  %s320_s4 = inlined_call_operand.vmem [shape: f32[8,1], index: 4, kind: input, shape index: {}]   ;;  %s321_s5 = inlined_call_operand.hbm [shape: f32[8,256], index: 5, kind: output, shape index: {}]  }
   0x1   :  { %v68_v0 = vld [vmem:[%s317_s1] sm:$0xff]  ;;  %212 = vset.pattern.permute.xlu1 %v238_v1  ;;  %210 = vset.pattern.permute.xlu0 %v239_v2 }
   0x2   :  { %104 = vperm.xlu1 %212, %v68_v0   ;;  %71 = vperm.xlu0 %210, %v68_v0  }
   0x3   :  { %10 = vsyncpa [#allocation3], 0  ;;  %v280_v3 = vld [vmem:[%s316_s0] sm:$0xff]  ;;  %173 = vmatprep.mubr.bf16.mxu0 %v239_v2  ;;  %v240_v4 = vmov 1   ;;  %s241_s22 = smov 1   ;;  %v286_v5 = vld [vmem:[%s316_s0 + $0x8] sm:$0xff]  ;;  %v24_v8 = vlaneseq }
   0x4   :  { %v111_v6 = vld [vmem:[%s318_s2] sm:$0xff]  ;;  %s242_s28 = smov 127   ;;  %vm134_vm6 = vcmask 1043456   ;;  %vm130_vm7 = vcmask 64512  }
   0x5   :  { %v124_v7 = vld [vmem:[%s320_s4] sm:$0xff]  ;;  %v25_v9 = vand.u32 127, %v24_v8  ;;  %s243_s4 = smov [#allocation2]  }
   0x6   :  { %211 = vset.pattern.permute.xlu0 %v240_v4  ;;  %51 = vrot.lane.b32.xlu1 %v280_v3, %s241_s22  ;;  %v121_v50 = vld [vmem:[%s319_s3] sm:$0xf]  ;;  %s194_s29 = sshll.u32 %s243_s4, 4  ;;  %s195_s29 = int_to_ptr.vmem [resolvable:$true] %s194_s29 }
   0x7   :  { %79 = vperm.xlu0 %211, %v68_v0   ;;  %v26_v10 = vadd.s32 128, %v25_v9  ;;  %v31_v12 = vand.u32 15, %v25_v9  ;;  %vm55_vm0 = vcmp.lt.s32.totalorder %v25_v9, 1  ;;  %vm90_vm3 = vcmp.lt.s32.totalorder %v25_v9, 127  ;;  %s214_s3 = scalar_lea.vmem %s195_s29, 256  ;;  %p219_p1 = scmp.lt.s32.totalorder %s195_s29, %s195_s29 }
   0x8   :  { %p215_p0 = scmp.ne.s32.totalorder %s195_s29, %s214_s3  ;;  %p220_p2 = scmp.lt.s32.totalorder %s214_s3, %s214_s3 }
   0x9   :  { %v38_v13 = vand.u32 15, %v26_v10  ;;  %v58_v15 = vadd.s32 4294967295, %v31_v12  ;;  %v93_v21 = vadd.s32 1, %v31_v12 }
   0xa   :  { %53 = vrot.lane.b32.xlu1 %v286_v5, %s241_s22  ;;  %p221_p3 = por %p220_p2, %p219_p1 }
   0xb   :  { %213 = vset.pattern.permute.xlu0 %v239_v2  ;;  %v59_v16 = vadd.s32 4294967295, %v38_v13  ;;  %vm60_vm1 = vcmp.ge.s32.totalorder %v58_v15, 0  ;;  %v94_v22 = vadd.s32 1, %v38_v13  ;;  %vm97_vm4 = vcmp.lt.s32.totalorder %v93_v21, 16 }
   0xc   :  { %114 = vperm.xlu0 %213, %v111_v6   ;;  %p222_p4 = pnand %p221_p3, %p215_p0 }
   0xd   :  { %vm61_vm2 = vcmp.ge.s32.totalorder %v59_v16, 0  ;;  %vm98_vm5 = vcmp.lt.s32.totalorder %v94_v22, 16 }
   0xe   :  { %86 = vrot.lane.b32.xlu1 %v280_v3, %s242_s28 }
  0x10   :  { %127 = vperm.xlu0 %213, %v124_v7  }
  0x12   :  { %88 = vrot.lane.b32.xlu1 %v286_v5, %s242_s28 }
  0x81   :  { %v105_v11 = vpop.permute.xlu1 %104  ;;  %v72_v17 = vpop.permute.xlu0 %71 }
  0x85   :  { %v52_v14 = vpop.permute.xlu1 %51 }
  0x86   :  { %v80_v25 = vpop.permute.xlu0 %79 }
  0x87   :  { %v82_v29 = vmul.f32 %v80_v25, %v280_v3  ;;  %v83_v30 = vmul.f32 %v80_v25, %v286_v5 }
  0x89   :  { %v54_v18 = vpop.permute.xlu1 %53 }
  0x8a   :  { %v56_v19 = vsel %vm55_vm0, %v52_v14, %v54_v18  ;;  %v57_v20 = vsel %vm55_vm0, %v54_v18, %v52_v14 }
  0x8b   :  { %v66_v23 = vsel %vm60_vm1, %v57_v20, 0.0  ;;  %v67_v24 = vsel %vm61_vm2, %v56_v19, 0.0  ;;  %v115_v42 = vpop.permute.xlu0 %114 }
  0x8c   :  { %v74_v27 = vmul.f32 %v72_v17, %v66_v23  ;;  %v75_v28 = vmul.f32 %v72_v17, %v67_v24 }
  0x8d   :  { %v87_v26 = vpop.permute.xlu1 %86 }
  0x8e   :  { %v84_v36 = vadd.f32 %v82_v29, %v74_v27  ;;  %v85_v37 = vadd.f32 %v83_v30, %v75_v28 }
  0x8f   :  { %v128_v51 = vpop.permute.xlu0 %127 }
  0x91   :  { %v89_v31 = vpop.permute.xlu1 %88 }
  0x92   :  { %v91_v32 = vsel %vm90_vm3, %v87_v26, %v89_v31  ;;  %v92_v33 = vsel %vm90_vm3, %v89_v31, %v87_v26 }
  0x93   :  { %v101_v34 = vsel %vm97_vm4, %v91_v32, 0.0  ;;  %v102_v35 = vsel %vm98_vm5, %v92_v33, 0.0 }
  0x94   :  { %v107_v38 = vmul.f32 %v105_v11, %v101_v34  ;;  %v108_v39 = vmul.f32 %v105_v11, %v102_v35 }
  0x96   :  { %v109_v40 = vadd.f32 %v107_v38, %v84_v36  ;;  %v110_v41 = vadd.f32 %v108_v39, %v85_v37 }
  0x98   :  { %v117_v43 = vadd.f32 %v115_v42, %v109_v40  ;;  %v118_v44 = vadd.f32 %v115_v42, %v110_v41 }
  0x9a   :  { %v119_v45 = vmax.f32 %v117_v43, 0.0  ;;  %v120_v46 = vmax.f32 %v118_v44, 0.0 }
  0x9c   :  { %v123_v47 = vpack.c.bf16 %v120_v46, %v120_v46  ;;  %v122_v48 = vpack.c.bf16 %v119_v45, %v119_v45 }
  0x9e   :  { %202 = vmatprep.subr.msk.bf16.mxu0 %vm134_vm6, %v123_v47  ;;  %v136_v49 = vsel %vm134_vm6, %v122_v48, 0 }
  0x9f   :  { %142 = vmatpush1.bf16.msra.mxu0 %v136_v49 }
  0xa2   :  { %203 = vmatmul.mubr.msk.bf16.vlgmr.msra.gmra.mrb[0].mxu0 %vm130_vm7, %v121_v50 }
 0x175   :  { %v175_v52 = vpop.f32.mrb[0].mxu0 }
 0x176   :  { %v176_v53 = vadd.f32 %v175_v52, %v128_v51  ;;  %v177_v54 = vpop.f32.mrb[1].mxu0 }
 0x177   :  { %v178_v55 = vadd.f32 %v177_v54, %v128_v51  ;;  %v179_v56 = vpop.f32.mrb[2].mxu0 }
 0x178   :  { %v182_v57 = vmax.f32 %v176_v53, 0.0  ;;  %v180_v58 = vpop.f32.mrb[3].mxu0 }
 0x179   :  { %v183_v59 = vmax.f32 %v178_v55, 0.0 }
 0x17a   :  { %v184_v60 = vadd.f32 %v182_v57, %v280_v3 }
 0x17b   :  { %v185_v61 = vadd.f32 %v183_v59, %v286_v5 }
 0x17c   :  { %186 = vst [vmem:[#allocation2] sm:$0xff] %v184_v60 }
 0x17d   :  { %187 = vst [vmem:[#allocation2 + $0x8] sm:$0xff] %v185_v61 }
 0x17e   :  { %225 = shalt.err (!%p222_p4)
}
 0x17f   :  { %s226_s7 = scalar_lea.hbm %s321_s5, 256 }
 0x180   :  { %p227_p5 = scmp.ne.s32.totalorder %s321_s5, %s226_s7  ;;  %p230_p6 = scmp.lt.u32.totalorder %s226_s7, %s321_s5 }
 0x182   :  { %p232_p7 = pnand %p230_p6, %p227_p5 }
 0x184   :  { %235 = shalt.err (!%p232_p7)
}
 0x185   :  { %197 = dma.vmem_to_hbm [thread:$0]  %s195_s29, 256, %s321_s5, [#allocation3]  }
 0x186   :  { %236 = dma.done.wait [#allocation3], 256  }
 0x187   :  { %237 = vsyncadd [#allocation3], 4294967040 }
 0x188   :  { %201 = vsyncpa [#allocation3], 1 }

</bundles_post_ra>
